<compile_context>
chip_gen: v7x
topology: tpu7x:2x2x1
jax: 0.10.0
libtpu: 0.0.40
codegen_flags: <defaults>
</compile_context>

<pallas_src>
import functools

import jax
import jax.numpy as jnp
import numpy as np
from jax.experimental import pallas as pl
from jax.experimental.pallas import tpu as pltpu

ALPHA = 0.2            # LeakyReLU negative slope (module's `alpha`)
NEG_INF = -9e15        # sentinel used only by the pure-JAX reference


def _round_up(x, m):
    return ((x + m - 1) // m) * m


def _vmem_capacity_bytes():
    """Per-core VMEM capacity; conservative fallback if the query is unavailable."""
    try:
        cap = getattr(pltpu.get_tpu_info(), "vmem_capacity_bytes", None)
        if cap:
            return int(cap)
    except Exception:
        pass
    return 64 * 1024 * 1024   # v7x per-TensorCore VMEM (smallest of v5e/v6e/v7x)


def _pick_row_tile(n, f_pad, target, vmem_budget):
    """Pass-2 row tile: multiple of 32 (int8 sublane tiling), sized against VMEM."""
    # Resident across the grid: Wh (bf16, ideally single-buffered) + s2 row (f32).
    resident = n * f_pad * 2 + n * 4
    # Per output row: int8 adj stripe (x2 buffers) + ~3 f32 (row, N) intermediates
    # (e, p, slack) + double-buffered f32 output row.
    per_row = 2 * n + 3 * 4 * n + 2 * 4 * f_pad
    avail = max(vmem_budget - resident, 32 * per_row)
    tm = min(target, avail // per_row, n)
    tm = max(32, (tm // 32) * 32)
    return n if tm >= n else tm


# ---------------------------------------------------------------------------
# Pass 1: Wh = h @ W_aug (MXU, bf16 in / f32 acc). W_aug carries c1 = W@a1 and
#         c2 = W@a2 in its zero padding, so the attention logits come out of the
#         same matmul — a pure MXU pass, no VPU/XLU reductions, one lane-dense store.
# ---------------------------------------------------------------------------
def project_kernel(h_ref, w_ref, wh_ref):
    wh_ref[...] = jnp.dot(h_ref[...], w_ref[...],
                          preferred_element_type=jnp.float32).astype(wh_ref.dtype)


# ---------------------------------------------------------------------------
# Pass 2: masked softmax over all neighbours + att @ Wh (MXU, bf16) + ELU.
#         Normalization happens AFTER the matmul; edge mask is multiplicative.
# ---------------------------------------------------------------------------
def attention_kernel(wh1_ref, wh2_ref, adj_ref, wh_ref, out_ref, *,
                     alpha, apply_elu, exp_dtype):
    # e_ij = LeakyReLU(s1_i + s2_j) in f32. The softmax shift uses the UNMASKED
    # row max: softmax is shift-invariant and e - m <= 0, so exp never overflows;
    # the edge mask is applied multiplicatively to p afterwards.
    e = wh1_ref[...] + wh2_ref[...]                       # (tm,1)+(1,N) -> (tm,N)
    e = jnp.maximum(e, alpha * e)                         # LeakyReLU, 1 VPU op
    m = jnp.max(e, axis=-1, keepdims=True)
    p = jnp.exp((e - m).astype(exp_dtype))                # bf16 EUP on v6e/v7x
    p = p * (adj_ref[...] > 0).astype(p.dtype)            # multiplicative edge mask
    # NOTE: assumes every row has at least one edge (e.g. self-loops), as usual
    # for GAT; a fully isolated row would divide by ~0 here (torch gives uniform).
    denom = jnp.sum(p.astype(jnp.float32), axis=-1, keepdims=True)
    # dropout(training=False) -> identity.
    acc = jnp.dot(p.astype(jnp.bfloat16), wh_ref[...],
                  preferred_element_type=jnp.float32)     # (tm, F_pad) f32
    # Normalize after the matmul: one (tm, F_pad) multiply instead of (tm, N).
    h_prime = acc * pl.reciprocal(denom, approx=True)     # EUP vrcp, off the VPU path
    if apply_elu:
        # ELU negative branch expm1(x) == tanh(x/2)*(exp(x)+1); clamp to <= 0 so
        # the discarded branch can never overflow (and exp stays cheap).
        neg = jnp.minimum(h_prime, 0.0)
        em1 = jnp.tanh(0.5 * neg) * (jnp.exp(neg) + 1.0)
        h_prime = jnp.where(h_prime > 0, h_prime, em1)
    out_ref[...] = h_prime


def gat_forward(h, adj, W, a, *, alpha=ALPHA, concat=True, block_rows=512):
    """Forward of GraphAttentionLayer: h (N,F_in), adj (N,N), W (F_in,F_out), a (2*F_out,1).

    block_rows default 512 (multiple of 256 to keep the MXU LHS full-height on
    v6e/v7x); the actual tile is shrunk to fit the detected VMEM budget.
    """
    N, F_in = h.shape
    F_out = W.shape[1]
    # Lane-dense feature dim, with >= 2 spare zero columns to host c1, c2.
    F_pad = _round_up(max(F_out + 2, 128), 128)

    W32 = W.astype(jnp.float32)
    a1 = a[:F_out, 0].astype(jnp.float32)
    a2 = a[F_out:, 0].astype(jnp.float32)
    W_p = jnp.zeros((F_in, F_pad), jnp.float32)
    W_p = W_p.at[:, :F_out].set(W32)
    W_p = W_p.at[:, F_out].set(W32 @ a1)       # -> column F_out of Wh is s1
    W_p = W_p.at[:, F_out + 1].set(W32 @ a2)   # -> column F_out+1 of Wh is s2

    # bf16 MXU operands (also halves HBM traffic for h and W).
    h_bf = h.astype(jnp.bfloat16)
    w_bf = W_p.astype(jnp.bfloat16)
    # int8 0/1 adjacency end-to-end; callers should pass int8/bool directly so this
    # conversion (an extra N^2 pass) is a no-op.
    adj_i8 = adj if adj.dtype == jnp.int8 else (adj > 0).astype(jnp.int8)

    vmem_cap = _vmem_capacity_bytes()
    vmem_limit = max(int(vmem_cap * 0.75), 32 * 1024 * 1024)   # ~96 MiB v5e/v6e, ~48 MiB v7x
    tm = _pick_row_tile(N, F_pad, block_rows, vmem_limit)
    nt = pl.cdiv(N, tm)

    # v5e (and older) have no bf16 VPU/EUP; keep the softmax exp in f32 there.
    kind = jax.devices()[0].device_kind.lower()
    bf16_exp_ok = ("v6" in kind) or ("v7" in kind)

    params = pltpu.CompilerParams(dimension_semantics=("parallel",),
                                  vmem_limit_bytes=vmem_limit)
    cost1 = pl.CostEstimate(flops=2 * N * F_in * F_pad, transcendentals=0,
                            bytes_accessed=N * F_in * 2 + F_in * F_pad * 2 + N * F_pad * 2)
    cost2 = pl.CostEstimate(flops=2 * N * N * F_pad + 8 * N * N,
                            transcendentals=N * N + 2 * N * F_pad,
                            bytes_accessed=N * N + 6 * N * F_pad + 8 * N)

    def run(single_buffer, exp_dtype):
        def resident(shape):
            # Grid-invariant input: fetched once; single-buffer it to halve its
            # VMEM footprint (most valuable on v7x's 64 MiB).
            zeros = (0,) * len(shape)
            kw = {"pipeline_mode": pl.Buffered(1)} if single_buffer else {}
            return pl.BlockSpec(shape, lambda i, zeros=zeros: zeros, **kw)

        wh = pl.pallas_call(
            project_kernel,
            out_shape=jax.ShapeDtypeStruct((N, F_pad), jnp.bfloat16),
            grid=(nt,),
            in_specs=[pl.BlockSpec((tm, F_in), lambda i: (i, 0)),
                      resident((F_in, F_pad))],
            out_specs=pl.BlockSpec((tm, F_pad), lambda i: (i, 0)),
            compiler_params=params,
            cost_estimate=cost1,
        )(h_bf, w_bf)

        # Attention logits fell out of the augmented matmul (bf16 storage; fine for
        # the 5e-2 tolerance, documented). Layout plumbing (slice/transpose) is done
        # once by XLA in the wrapper, not per-tile in the kernel.
        wh1 = wh[:, F_out:F_out + 1].astype(jnp.float32)               # (N, 1)
        wh2_row = wh[:, F_out + 1].astype(jnp.float32).reshape(1, N)   # (1, N)

        attn = functools.partial(attention_kernel, alpha=alpha,
                                 apply_elu=concat, exp_dtype=exp_dtype)
        return pl.pallas_call(
            attn,
            out_shape=jax.ShapeDtypeStruct((N, F_pad), jnp.float32),
            grid=(nt,),
            in_specs=[pl.BlockSpec((tm, 1), lambda i: (i, 0)),
                      resident((1, N)),
                      pl.BlockSpec((tm, N), lambda i: (i, 0)),   # int8 adj stripe
                      resident((N, F_pad))],
            out_specs=pl.BlockSpec((tm, F_pad), lambda i: (i, 0)),
            compiler_params=params,
            cost_estimate=cost2,
        )(wh1, wh2_row, adj_i8, wh)

    try:
        out = run(True, jnp.bfloat16 if bf16_exp_ok else jnp.float32)
    except Exception:
        # TODO(synk): fallback for Pallas builds without pipeline_mode=pl.Buffered(1)
        # (or bf16 exp lowering): default double-buffering + f32 exp; same results.
        out = run(False, jnp.float32)

    return out[:, :F_out]


# ---------------------------------------------------------------------------
# Pure-JAX reference (torch-faithful, all f32) and test harness.
# ---------------------------------------------------------------------------
def gat_reference(h, adj, W, a, alpha=ALPHA):
    F_out = W.shape[1]
    Wh = h @ W
    e = Wh @ a[:F_out, :] + (Wh @ a[F_out:, :]).T
    e = jnp.where(e > 0, e, alpha * e)
    att = jnp.where(adj > 0, e, NEG_INF)
    att = jax.nn.softmax(att, axis=1)
    h_prime = att @ Wh
    return jnp.where(h_prime > 0, h_prime, jnp.expm1(h_prime))   # ELU (concat=True)


def xavier_uniform(key, shape, gain):
    fan_in, fan_out = shape
    bound = gain * np.sqrt(6.0 / (fan_in + fan_out))
    return jax.random.uniform(key, shape, jnp.float32, -bound, bound)


if __name__ == "__main__":
    N, F_IN, F_OUT = 128, 64, 32
    key = jax.random.PRNGKey(0)
    k_h, k_adj, k_w, k_a = jax.random.split(key, 4)

    h = jax.random.normal(k_h, (N, F_IN), jnp.float32)
    adj_f = (jax.random.uniform(k_adj, (N, N)) > 0.7).astype(jnp.float32)
    # self loops so every softmax row has at least one edge (well-defined)
    adj_f = jnp.maximum(adj_f, jnp.eye(N, dtype=jnp.float32))
    adj_i8 = adj_f.astype(jnp.int8)          # int8 adjacency end-to-end

    W = xavier_uniform(k_w, (F_IN, F_OUT), gain=1.414)
    a = xavier_uniform(k_a, (2 * F_OUT, 1), gain=1.414)

    # block_rows=64 -> grid of 2 row tiles, exercising the tiled / parallel path.
    out = gat_forward(h, adj_i8, W, a, block_rows=64)
    out = jax.block_until_ready(out)

    ref = gat_reference(h, adj_f, W, a)
    # Tolerance loosened vs the f32 reference: both matmuls and the logit storage
    # run in bf16 on the MXU (softmax accumulation stays f32).
    np.testing.assert_allclose(np.asarray(out), np.asarray(ref), rtol=5e-2, atol=5e-2)

    print("KERNEL_OK")
</pallas_src>

<mosaic_0001>
module attributes {stable_mosaic.version = 11 : i64} {
  func.func @project_kernel(%arg0: i32, %arg1: memref<64x64xbf16, #tpu.memory_space<vmem>>, %arg2: memref<64x128xbf16, #tpu.memory_space<vmem>>, %arg3: memref<64x128xbf16, #tpu.memory_space<vmem>>) attributes {dimension_semantics = [#tpu.dimension_semantics<parallel>], iteration_bounds = array<i64: 2>, scalar_prefetch = 0 : i64, scratch_operands = 0 : i64, tpu.core_type = #tpu.core_type<tc>, window_params = [{transform_indices = @transform_0, window_bounds = array<i64: 64, 64>}, {pipeline_mode = #tpu.pipeline_mode<synchronous>, transform_indices = @transform_1, window_bounds = array<i64: 64, 128>}, {transform_indices = @transform_2, window_bounds = array<i64: 64, 128>}]} {
    %c0 = arith.constant 0 : index
    %c0_0 = arith.constant 0 : index
    %0 = vector.load %arg1[%c0, %c0_0] : memref<64x64xbf16, #tpu.memory_space<vmem>>, vector<64x64xbf16>
    %c0_1 = arith.constant 0 : index
    %c0_2 = arith.constant 0 : index
    %1 = vector.load %arg2[%c0_1, %c0_2] : memref<64x128xbf16, #tpu.memory_space<vmem>>, vector<64x128xbf16>
    %cst = arith.constant dense<0.000000e+00> : vector<64x128xf32>
    %2 = tpu.matmul %0, %1, %cst {dimension_numbers = #tpu.dot_dimension_numbers<[1], [0], [0], [1], [0, 0, 1, 1], [], []>} : vector<64x64xbf16>, vector<64x128xbf16>, vector<64x128xf32> -> vector<64x128xf32>
    %3 = arith.truncf %2 : vector<64x128xf32> to vector<64x128xbf16>
    %c0_3 = arith.constant 0 : index
    %c0_4 = arith.constant 0 : index
    %4 = vector.load %arg3[%c0_3, %c0_4] : memref<64x128xbf16, #tpu.memory_space<vmem>>, vector<64x128xbf16>
    tpu.vector_store %arg3[%c0_3, %c0_4], %3 {strides = array<i32>} : memref<64x128xbf16, #tpu.memory_space<vmem>>, vector<64x128xbf16>,
    return
  }
  func.func @transform_0(%arg0: i32) -> (i32, i32) {
    %c0_i32 = arith.constant 0 : i32
    %c0_i32_0 = arith.constant 0 : i32
    return %arg0, %c0_i32 : i32, i32
  }
  func.func @transform_1(%arg0: i32) -> (i32, i32) {
    %c0_i32 = arith.constant 0 : i32
    %c0_i32_0 = arith.constant 0 : i32
    %c0_i32_1 = arith.constant 0 : i32
    return %c0_i32, %c0_i32_0 : i32, i32
  }
  func.func @transform_2(%arg0: i32) -> (i32, i32) {
    %c0_i32 = arith.constant 0 : i32
    %c0_i32_0 = arith.constant 0 : i32
    return %arg0, %c0_i32 : i32, i32
  }
}

module attributes {stable_mosaic.version = 11 : i64} {
  func.func @project_kernel(%arg0: i32, %arg1: memref<64x64xbf16, #tpu.memory_space<vmem>>, %arg2: memref<64x128xbf16, #tpu.memory_space<vmem>>, %arg3: memref<64x128xbf16, #tpu.memory_space<vmem>>) attributes {dimension_semantics = [#tpu.dimension_semantics<parallel>], iteration_bounds = array<i64: 2>, scalar_prefetch = 0 : i64, scratch_operands = 0 : i64, tpu.core_type = #tpu.core_type<tc>, window_params = [{transform_indices = @transform_0, window_bounds = array<i64: 64, 64>}, {pipeline_mode = #tpu.pipeline_mode<synchronous>, transform_indices = @transform_1, window_bounds = array<i64: 64, 128>}, {transform_indices = @transform_2, window_bounds = array<i64: 64, 128>}]} {
    %c0 = arith.constant 0 : index
    %c0_0 = arith.constant 0 : index
    %0 = vector.load %arg1[%c0, %c0_0] : memref<64x64xbf16, #tpu.memory_space<vmem>>, vector<64x64xbf16>
    %c0_1 = arith.constant 0 : index
    %c0_2 = arith.constant 0 : index
    %1 = vector.load %arg2[%c0_1, %c0_2] : memref<64x128xbf16, #tpu.memory_space<vmem>>, vector<64x128xbf16>
    %cst = arith.constant dense<0.000000e+00> : vector<64x128xf32>
    %2 = tpu.matmul %0, %1, %cst {dimension_numbers = #tpu.dot_dimension_numbers<[1], [0], [0], [1], [0, 0, 1, 1], [], []>} : vector<64x64xbf16>, vector<64x128xbf16>, vector<64x128xf32> -> vector<64x128xf32>
    %3 = arith.truncf %2 : vector<64x128xf32> to vector<64x128xbf16>
    %c0_3 = arith.constant 0 : index
    %c0_4 = arith.constant 0 : index
    %4 = vector.load %arg3[%c0_3, %c0_4] : memref<64x128xbf16, #tpu.memory_space<vmem>>, vector<64x128xbf16>
    tpu.vector_store %arg3[%c0_3, %c0_4], %3 {strides = array<i32>} : memref<64x128xbf16, #tpu.memory_space<vmem>>, vector<64x128xbf16>,
    return
  }
  func.func @transform_0(%arg0: i32) -> (i32, i32) {
    %c0_i32 = arith.constant 0 : i32
    %c0_i32_0 = arith.constant 0 : i32
    return %arg0, %c0_i32 : i32, i32
  }
  func.func @transform_1(%arg0: i32) -> (i32, i32) {
    %c0_i32 = arith.constant 0 : i32
    %c0_i32_0 = arith.constant 0 : i32
    %c0_i32_1 = arith.constant 0 : i32
    return %c0_i32, %c0_i32_0 : i32, i32
  }
  func.func @transform_2(%arg0: i32) -> (i32, i32) {
    %c0_i32 = arith.constant 0 : i32
    %c0_i32_0 = arith.constant 0 : i32
    return %arg0, %c0_i32 : i32, i32
  }
}

</mosaic_0001>

<bundles_post_ra>
// kernel: tpu_custom_call.1
= control target key start
LH: loop header
LB: loop body
LE: loop exit
PB: predicated region body
PF: predicated region fallthrough
CT: control target
= control target key end

     0   :  { %7 = vsyncpa [#allocation3], 0  ;;  %s745_s0 = inlined_call_operand.vmem [shape: bf16[128,64], index: 0, kind: input, shape index: {}]   ;;  %s746_s1 = inlined_call_operand.vmem [shape: bf16[64,128], index: 1, kind: input, shape index: {}]   ;;  %s747_s2 = inlined_call_operand.hbm [shape: bf16[128,128], index: 2, kind: output, shape index: {}]  }
   0x1   :  { %9 = vsyncpa [#allocation3 + $0x1], 0  ;;  %s627_s9 = smov 0   ;;  %s629_s10 = smov 0  }
   0x2   :  { %s631_s11 = smov 0   ;;  %s633_s12 = smov 0  }
   0x3 LB: > { %s648_s13 = sadd.s32 4294967295, %s607_s12   ;;  %s400_s14 = sadd.s32 4294967294, %s607_s12   ;;  %s607_s12 = sphi %s633_s12, %s753_s12   ;;  %s603_s11 = sphi %s631_s11, %s752_s11   ;;  %s599_s10 = sphi %s629_s10, %s751_s10   ;;  %s595_s9 = sphi %s627_s9, %s750_s9  }
   0x4   : > { %s652_s15 = sadd.s32 1, %s607_s12   ;;  %s69_s16 = sadd.s32 1, %s603_s11 }
   0x5   : > { %s66_s17 = ssub.s32 %s607_s12, %s652_s15  ;;  %p79_p0 = scmp.ne.s32.totalorder %s603_s11, %s599_s10 }
   0x6   : > { %p67_p1 = scmp.eq.s32.totalorder %s66_s17, 0  ;;  %p80_p2 = scmp.eq.s32.totalorder %s648_s13, 1 }
   0x7   : > { %p85_p3 = scmp.ne.s32.totalorder %s599_s10, %s595_s9  ;;  %p86_p4 = scmp.eq.s32.totalorder %s400_s14, 1 }
   0x8   : > { %s663_s18 = scalar_select %p67_p1, %s603_s11, %s69_s16  }
   0x9   : > { %p665_p5 = por %p80_p2, %p79_p0  ;;  %p669_p6 = por %p86_p4, %p85_p3 }
   0xa   : > { %p403_p7 = scmp.ge.s32.totalorder %s607_s12, 1  ;;  %p116_p8 = scmp.lt.s32.totalorder %s607_s12, 3 }
   0xc   : > { %p117_p9 = pnand %p403_p7, %p116_p8 }
   0xd   : > { %v537_v0 = vld [vmem:[%s746_s1] sm:$0xff] (!%p117_p9)   ;;  %s405_s23 = sshll.u32 (!%p117_p9), %s648_s13, 3  ;;  %v538_v1 = vld [vmem:[%s746_s1 + $0x8] sm:$0xff] (!%p117_p9)   ;;  %v539_v2 = vld [vmem:[%s746_s1 + $0x10] sm:$0xff] (!%p117_p9)   ;;  %vm206_vm0 = vcmask (!%p117_p9), 523264   ;;  %s135_s6 = sand.u32 (!%p117_p9), 1, %s599_s10  }
   0xe   : > { %120 = sbr.rel (%p117_p9) target bundleno = 262 (0x106), region = 28  ;;  %p139_p10 = scmp.lt.s32.totalorder (!%p117_p9), %s405_s23, 15  ;;  %472 = vmatprep.subr.bf16.mxu0 (!%p117_p9), %v537_v0  ;;  %488 = vmatprep.subr.bf16.mxu1 (!%p117_p9), %v537_v0  ;;  %v540_v3 = vld [vmem:[%s746_s1 + $0x18] sm:$0xff] (!%p117_p9)  }
   0xf   : > { %473 = vmatpush3.bf16.msra.mxu0 (!%p117_p9), %v537_v0  ;;  %492 = vmatpush3.bf16.msra.mxu1 (!%p117_p9), %v537_v0  ;;  %s404_s7 = sshll.u32 (!%p117_p9), %s135_s6, 5  ;;  %s440_s16 = sshll.u32 (!%p117_p9), %s648_s13, 9 }
  0x10   : > { %474 = vmatprep.subr.bf16.mxu0 (!%p117_p9), %v538_v1  ;;  %489 = vmatprep.subr.bf16.mxu1 (!%p117_p9), %v538_v1  ;;  %s137_s8 = scalar_lea.vmem (!%p117_p9), [#allocation2], %s404_s7  ;;  %s702_s22 = scalar_lea.hbm (!%p117_p9), %s747_s2, %s440_s16 }
  0x11   : > { %s338_s14 = sshll.u32 (!%p117_p9), %s137_s8, 4  ;;  %s704_s13 = scalar_lea.sflag (!%p117_p9), [#allocation3], %s135_s6  ;;  %s697_s14 = int_to_ptr.vmem [resolvable:$true] %s338_s14 }
  0x12   : > { %s609_s24 = smov (!%p117_p9), [#allocation2]  }
  0x13   : > { %475 = vmatpush3.bf16.msra.mxu0 (!%p117_p9), %v538_v1  ;;  %493 = vmatpush3.bf16.msra.mxu1 (!%p117_p9), %v538_v1  ;;  %s549_s25 = sshll.u32 (!%p117_p9), %s609_s24, 4  ;;  %s550_s25 = int_to_ptr.vmem [resolvable:$false] %s549_s25 }
  0x14   : > { %476 = vmatprep.subr.bf16.mxu0 (!%p117_p9), %v539_v2  ;;  %490 = vmatprep.subr.bf16.mxu1 (!%p117_p9), %v539_v2  ;;  %s551_s26 = scalar_lea.vmem (!%p117_p9), %s550_s25, 1024  ;;  %p552_p0 = scmp.lt.s32.totalorder (!%p117_p9), %s697_s14, %s550_s25 }
  0x15   : > { %s755_s23 = smov (!%p139_p10, %s405_s23), 15 }
  0x16   : > { %s406_s28 = sshll.u32 %s755_s23, 2  ;;  %s545_s23 = scalar_lea.vmem %s697_s14, 512 }
  0x17   : > { %s142_s5 = scalar_lea.vmem %s745_s0, %s406_s28  ;;  %477 = vmatpush3.bf16.msra.mxu0 %v539_v2  ;;  %494 = vmatpush3.bf16.msra.mxu1 %v539_v2  ;;  %p546_p11 = scmp.ne.s32.totalorder %s697_s14, %s545_s23 }
  0x18   : > { %v541_v4 = vld [vmem:[%s142_s5] sm:$0xff]   ;;  %v542_v5 = vld [vmem:[%s142_s5 + $0x10] sm:$0xff]   ;;  %478 = vmatprep.subr.bf16.mxu0 %v540_v3  ;;  %491 = vmatprep.subr.bf16.mxu1 %v540_v3  ;;  %v543_v6 = vld [vmem:[%s142_s5 + $0x8] sm:$0xff]   ;;  %p553_p1 = scmp.lt.s32.totalorder %s551_s26, %s545_s23 }
  0x19   : > { %480 = vmatprep.mubr.msk.bf16.mxu0 %vm206_vm0, %v541_v4  ;;  %484 = vmatprep.mubr.msk.bf16.mxu1 %vm206_vm0, %v542_v5  ;;  %v544_v7 = vld [vmem:[%s142_s5 + $0x18] sm:$0xff]   ;;  %p547_p12 = pnand %p546_p11, %p665_p5 }
  0x1a   : > { %p554_p2 = por %p553_p1, %p552_p0 }
  0x1b   : > { %479 = vmatpush3.bf16.msra.mxu0 %v540_v3  ;;  %495 = vmatpush3.bf16.msra.mxu1 %v540_v3  ;;  %p548_p13 = pneg %p547_p12 }
  0x1d   : > { %p555_p3 = pnand %p554_p2, %p548_p13 }
  0x1e   : > { %481 = vmatmul.mubr.msk.bf16.vlgmr.msra.gmra.mrb[0].mxu0 %vm206_vm0, %v543_v6  ;;  %485 = vmatmul.mubr.msk.bf16.vlgmr.msra.gmra.mrb[0].mxu1 %vm206_vm0, %v544_v7 }
  0xf1   : > { %v482_v8 = vpop.f32.mrb[0].mxu0  ;;  %v486_v9 = vpop.f32.mrb[0].mxu1 }
  0xf2   : > { %v253_v10 = vpop.f32.mrb[1].mxu0  ;;  %v269_v11 = vpop.f32.mrb[1].mxu1 }
  0xf3   : > { %v483_v12 = vpop.f32.mrb[2].mxu0  ;;  %v487_v13 = vpop.f32.mrb[2].mxu1 }
  0xf4   : > { %v449_v14 = vpack.c.bf16 %v483_v12, %v482_v8  ;;  %v459_v15 = vpack.c.bf16 %v487_v13, %v486_v9  ;;  %v256_v16 = vpop.f32.mrb[3].mxu0  ;;  %v272_v17 = vpop.f32.mrb[3].mxu1 }
  0xf5   : > { %v444_v18 = vpack.c.bf16 %v256_v16, %v253_v10  ;;  %v454_v19 = vpack.c.bf16 %v272_v17, %v269_v11 }
  0xf6   : > { %461 = vst [vmem:[%s137_s8 + $0x8] sm:$0xff] %v449_v14   ;;  %463 = vst [vmem:[%s137_s8 + $0x18] sm:$0xff] %v459_v15  }
  0xf7   : > { %445 = vst [vmem:[%s137_s8] sm:$0xff] %v444_v18   ;;  %462 = vst [vmem:[%s137_s8 + $0x10] sm:$0xff] %v454_v19  }
  0xf8   : > { %558 = shalt.err (!%p555_p3)
}
  0xf9   : > { %s559_s27 = scalar_lea.hbm %s702_s22, 512  ;;  %s563_s30 = scalar_lea.hbm %s747_s2, 1024 }
  0xfa   : > { %p560_p4 = scmp.ne.s32.totalorder %s702_s22, %s559_s27  ;;  %p564_p9 = scmp.lt.u32.totalorder %s702_s22, %s747_s2 }
  0xfb   : > { %p565_p10 = scmp.lt.u32.totalorder %s563_s30, %s559_s27  ;;  %p567_p12 = scmp.lt.u32.totalorder %s559_s27, %s702_s22 }
  0xfc   : > { %p561_p7 = pnand %p560_p4, %p665_p5 }
  0xfd   : > { %p566_p11 = por %p565_p10, %p564_p9 }
  0xfe   : > { %p562_p8 = pneg %p561_p7 }
  0xff   : > { %p568_p13 = por %p567_p12, %p566_p11 }
 0x101   : > { %p569_p0 = pnand %p568_p13, %p562_p8 }
 0x103   : > { %572 = shalt.err (!%p569_p0)
}
 0x104   : > { %s610_s5 = smov 64   ;;  %s611_s6 = smov 4  }
 0x105   : > { %496 = dma.vmem_to_hbm [thread:$0]  (%p665_p5), %s697_s14, 512, %s702_s22, %s704_s13, %s610_s5, %s610_s5, %s611_s6  }
 0x106 PF: > { %p502_p1 = scmp.ge.s32.totalorder %s607_s12, 2  ;;  %s353_s7 = sand.u32 1, %s595_s9  }
 0x107   : > { %s354_s8 = scalar_lea.sflag [#allocation3], %s353_s7 }
 0x108   : > { %p499_p2 = pnand %p502_p1, %p669_p6 }
 0x10a   : > { %590 = dma.done.wait (!%p499_p2), %s354_s8, 512  }
 0x10b   : > { %592 = vsyncadd (!%p499_p2), %s354_s8, 4294966784  ;;  %p12_p3 = scmp.ge.s32.totalorder %s652_s15, 4   ;;  %s750_s9 = smov %s599_s10 }
 0x10c   : > { %s751_s10 = smov %s603_s11  ;;  %s752_s11 = smov %s663_s18 }
 0x10d   : > { %s753_s12 = smov %s652_s15  ;;  %14 = sbr.rel (!%p12_p3) target bundleno = 3 (0x3), region = 63 }
 0x114   :  { %359 = vsyncpa [#allocation3], 1 }
 0x115   :  { %361 = vsyncpa [#allocation3 + $0x1], 1 }

// kernel: tpu_custom_call.1
= control target key start
LH: loop header
LB: loop body
LE: loop exit
PB: predicated region body
PF: predicated region fallthrough
CT: control target
= control target key end

     0   :  { %7 = vsyncpa [#allocation3], 0  ;;  %s745_s0 = inlined_call_operand.vmem [shape: bf16[128,64], index: 0, kind: input, shape index: {}]   ;;  %s746_s1 = inlined_call_operand.vmem [shape: bf16[64,128], index: 1, kind: input, shape index: {}]   ;;  %s747_s2 = inlined_call_operand.hbm [shape: bf16[128,128], index: 2, kind: output, shape index: {}]  }
   0x1   :  { %9 = vsyncpa [#allocation3 + $0x1], 0  ;;  %s627_s9 = smov 0   ;;  %s629_s10 = smov 0  }
   0x2   :  { %s631_s11 = smov 0   ;;  %s633_s12 = smov 0  }
   0x3 LB: > { %s648_s13 = sadd.s32 4294967295, %s607_s12   ;;  %s400_s14 = sadd.s32 4294967294, %s607_s12   ;;  %s607_s12 = sphi %s633_s12, %s753_s12   ;;  %s603_s11 = sphi %s631_s11, %s752_s11   ;;  %s599_s10 = sphi %s629_s10, %s751_s10   ;;  %s595_s9 = sphi %s627_s9, %s750_s9  }
   0x4   : > { %s652_s15 = sadd.s32 1, %s607_s12   ;;  %s69_s16 = sadd.s32 1, %s603_s11 }
   0x5   : > { %s66_s17 = ssub.s32 %s607_s12, %s652_s15  ;;  %p79_p0 = scmp.ne.s32.totalorder %s603_s11, %s599_s10 }
   0x6   : > { %p67_p1 = scmp.eq.s32.totalorder %s66_s17, 0  ;;  %p80_p2 = scmp.eq.s32.totalorder %s648_s13, 1 }
   0x7   : > { %p85_p3 = scmp.ne.s32.totalorder %s599_s10, %s595_s9  ;;  %p86_p4 = scmp.eq.s32.totalorder %s400_s14, 1 }
   0x8   : > { %s663_s18 = scalar_select %p67_p1, %s603_s11, %s69_s16  }
   0x9   : > { %p665_p5 = por %p80_p2, %p79_p0  ;;  %p669_p6 = por %p86_p4, %p85_p3 }
   0xa   : > { %p403_p7 = scmp.ge.s32.totalorder %s607_s12, 1  ;;  %p116_p8 = scmp.lt.s32.totalorder %s607_s12, 3 }
   0xc   : > { %p117_p9 = pnand %p403_p7, %p116_p8 }
   0xd   : > { %v537_v0 = vld [vmem:[%s746_s1] sm:$0xff] (!%p117_p9)   ;;  %s405_s23 = sshll.u32 (!%p117_p9), %s648_s13, 3  ;;  %v538_v1 = vld [vmem:[%s746_s1 + $0x8] sm:$0xff] (!%p117_p9)   ;;  %v539_v2 = vld [vmem:[%s746_s1 + $0x10] sm:$0xff] (!%p117_p9)   ;;  %vm206_vm0 = vcmask (!%p117_p9), 523264   ;;  %s135_s6 = sand.u32 (!%p117_p9), 1, %s599_s10  }
   0xe   : > { %120 = sbr.rel (%p117_p9) target bundleno = 262 (0x106), region = 28  ;;  %p139_p10 = scmp.lt.s32.totalorder (!%p117_p9), %s405_s23, 15  ;;  %472 = vmatprep.subr.bf16.mxu0 (!%p117_p9), %v537_v0  ;;  %488 = vmatprep.subr.bf16.mxu1 (!%p117_p9), %v537_v0  ;;  %v540_v3 = vld [vmem:[%s746_s1 + $0x18] sm:$0xff] (!%p117_p9)  }
   0xf   : > { %473 = vmatpush3.bf16.msra.mxu0 (!%p117_p9), %v537_v0  ;;  %492 = vmatpush3.bf16.msra.mxu1 (!%p117_p9), %v537_v0  ;;  %s404_s7 = sshll.u32 (!%p117_p9), %s135_s6, 5  ;;  %s440_s16 = sshll.u32 (!%p117_p9), %s648_s13, 9 }
  0x10   : > { %474 = vmatprep.subr.bf16.mxu0 (!%p117_p9), %v538_v1  ;;  %489 = vmatprep.subr.bf16.mxu1 (!%p117_p9), %v538_v1  ;;  %s137_s8 = scalar_lea.vmem (!%p117_p9), [#allocation2], %s404_s7  ;;  %s702_s22 = scalar_lea.hbm (!%p117_p9), %s747_s2, %s440_s16 }
  0x11   : > { %s338_s14 = sshll.u32 (!%p117_p9), %s137_s8, 4  ;;  %s704_s13 = scalar_lea.sflag (!%p117_p9), [#allocation3], %s135_s6  ;;  %s697_s14 = int_to_ptr.vmem [resolvable:$true] %s338_s14 }
  0x12   : > { %s609_s24 = smov (!%p117_p9), [#allocation2]  }
  0x13   : > { %475 = vmatpush3.bf16.msra.mxu0 (!%p117_p9), %v538_v1  ;;  %493 = vmatpush3.bf16.msra.mxu1 (!%p117_p9), %v538_v1  ;;  %s549_s25 = sshll.u32 (!%p117_p9), %s609_s24, 4  ;;  %s550_s25 = int_to_ptr.vmem [resolvable:$false] %s549_s25 }
  0x14   : > { %476 = vmatprep.subr.bf16.mxu0 (!%p117_p9), %v539_v2  ;;  %490 = vmatprep.subr.bf16.mxu1 (!%p117_p9), %v539_v2  ;;  %s551_s26 = scalar_lea.vmem (!%p117_p9), %s550_s25, 1024  ;;  %p552_p0 = scmp.lt.s32.totalorder (!%p117_p9), %s697_s14, %s550_s25 }
  0x15   : > { %s755_s23 = smov (!%p139_p10, %s405_s23), 15 }
  0x16   : > { %s406_s28 = sshll.u32 %s755_s23, 2  ;;  %s545_s23 = scalar_lea.vmem %s697_s14, 512 }
  0x17   : > { %s142_s5 = scalar_lea.vmem %s745_s0, %s406_s28  ;;  %477 = vmatpush3.bf16.msra.mxu0 %v539_v2  ;;  %494 = vmatpush3.bf16.msra.mxu1 %v539_v2  ;;  %p546_p11 = scmp.ne.s32.totalorder %s697_s14, %s545_s23 }
  0x18   : > { %v541_v4 = vld [vmem:[%s142_s5] sm:$0xff]   ;;  %v542_v5 = vld [vmem:[%s142_s5 + $0x10] sm:$0xff]   ;;  %478 = vmatprep.subr.bf16.mxu0 %v540_v3  ;;  %491 = vmatprep.subr.bf16.mxu1 %v540_v3  ;;  %v543_v6 = vld [vmem:[%s142_s5 + $0x8] sm:$0xff]   ;;  %p553_p1 = scmp.lt.s32.totalorder %s551_s26, %s545_s23 }
  0x19   : > { %480 = vmatprep.mubr.msk.bf16.mxu0 %vm206_vm0, %v541_v4  ;;  %484 = vmatprep.mubr.msk.bf16.mxu1 %vm206_vm0, %v542_v5  ;;  %v544_v7 = vld [vmem:[%s142_s5 + $0x18] sm:$0xff]   ;;  %p547_p12 = pnand %p546_p11, %p665_p5 }
  0x1a   : > { %p554_p2 = por %p553_p1, %p552_p0 }
  0x1b   : > { %479 = vmatpush3.bf16.msra.mxu0 %v540_v3  ;;  %495 = vmatpush3.bf16.msra.mxu1 %v540_v3  ;;  %p548_p13 = pneg %p547_p12 }
  0x1d   : > { %p555_p3 = pnand %p554_p2, %p548_p13 }
  0x1e   : > { %481 = vmatmul.mubr.msk.bf16.vlgmr.msra.gmra.mrb[0].mxu0 %vm206_vm0, %v543_v6  ;;  %485 = vmatmul.mubr.msk.bf16.vlgmr.msra.gmra.mrb[0].mxu1 %vm206_vm0, %v544_v7 }
  0xf1   : > { %v482_v8 = vpop.f32.mrb[0].mxu0  ;;  %v486_v9 = vpop.f32.mrb[0].mxu1 }
  0xf2   : > { %v253_v10 = vpop.f32.mrb[1].mxu0  ;;  %v269_v11 = vpop.f32.mrb[1].mxu1 }
  0xf3   : > { %v483_v12 = vpop.f32.mrb[2].mxu0  ;;  %v487_v13 = vpop.f32.mrb[2].mxu1 }
  0xf4   : > { %v449_v14 = vpack.c.bf16 %v483_v12, %v482_v8  ;;  %v459_v15 = vpack.c.bf16 %v487_v13, %v486_v9  ;;  %v256_v16 = vpop.f32.mrb[3].mxu0  ;;  %v272_v17 = vpop.f32.mrb[3].mxu1 }
  0xf5   : > { %v444_v18 = vpack.c.bf16 %v256_v16, %v253_v10  ;;  %v454_v19 = vpack.c.bf16 %v272_v17, %v269_v11 }
  0xf6   : > { %461 = vst [vmem:[%s137_s8 + $0x8] sm:$0xff] %v449_v14   ;;  %463 = vst [vmem:[%s137_s8 + $0x18] sm:$0xff] %v459_v15  }
  0xf7   : > { %445 = vst [vmem:[%s137_s8] sm:$0xff] %v444_v18   ;;  %462 = vst [vmem:[%s137_s8 + $0x10] sm:$0xff] %v454_v19  }
  0xf8   : > { %558 = shalt.err (!%p555_p3)
}
  0xf9   : > { %s559_s27 = scalar_lea.hbm %s702_s22, 512  ;;  %s563_s30 = scalar_lea.hbm %s747_s2, 1024 }
  0xfa   : > { %p560_p4 = scmp.ne.s32.totalorder %s702_s22, %s559_s27  ;;  %p564_p9 = scmp.lt.u32.totalorder %s702_s22, %s747_s2 }
  0xfb   : > { %p565_p10 = scmp.lt.u32.totalorder %s563_s30, %s559_s27  ;;  %p567_p12 = scmp.lt.u32.totalorder %s559_s27, %s702_s22 }
  0xfc   : > { %p561_p7 = pnand %p560_p4, %p665_p5 }
  0xfd   : > { %p566_p11 = por %p565_p10, %p564_p9 }
  0xfe   : > { %p562_p8 = pneg %p561_p7 }
  0xff   : > { %p568_p13 = por %p567_p12, %p566_p11 }
 0x101   : > { %p569_p0 = pnand %p568_p13, %p562_p8 }
 0x103   : > { %572 = shalt.err (!%p569_p0)
}
 0x104   : > { %s610_s5 = smov 64   ;;  %s611_s6 = smov 4  }
 0x105   : > { %496 = dma.vmem_to_hbm [thread:$0]  (%p665_p5), %s697_s14, 512, %s702_s22, %s704_s13, %s610_s5, %s610_s5, %s611_s6  }
 0x106 PF: > { %p502_p1 = scmp.ge.s32.totalorder %s607_s12, 2  ;;  %s353_s7 = sand.u32 1, %s595_s9  }
 0x107   : > { %s354_s8 = scalar_lea.sflag [#allocation3], %s353_s7 }
 0x108   : > { %p499_p2 = pnand %p502_p1, %p669_p6 }
 0x10a   : > { %590 = dma.done.wait (!%p499_p2), %s354_s8, 512  }
 0x10b   : > { %592 = vsyncadd (!%p499_p2), %s354_s8, 4294966784  ;;  %p12_p3 = scmp.ge.s32.totalorder %s652_s15, 4   ;;  %s750_s9 = smov %s599_s10 }
 0x10c   : > { %s751_s10 = smov %s603_s11  ;;  %s752_s11 = smov %s663_s18 }
 0x10d   : > { %s753_s12 = smov %s652_s15  ;;  %14 = sbr.rel (!%p12_p3) target bundleno = 3 (0x3), region = 63 }
 0x114   :  { %359 = vsyncpa [#allocation3], 1 }
 0x115   :  { %361 = vsyncpa [#allocation3 + $0x1], 1 }

</bundles_post_ra>
